<compile_context>
chip_gen: v5e
topology: v5e:2x2
jax: 0.10.0
libtpu: 0.0.40
codegen_flags: <defaults>
</compile_context>

<pallas_src>
import jax
import jax.numpy as jnp
from jax import lax
from jax.experimental import pallas as pl
from jax.experimental.pallas import tpu as pltpu


def _attn_kernel(x_ref, wqkv_ref, o_ref):
    # x_ref:    (Bblk, T, C)        f32
    # wqkv_ref: (C, total_pad)      bf16, [Wq*scale | Wk | Wv | 0-pad] -> one 128-lane tile
    # o_ref:    (Bblk, T, H)        stored at true head width (narrow/masked store)
    b_blk, T, C = x_ref.shape
    H = o_ref.shape[-1]
    total_pad = wqkv_ref.shape[-1]

    # Fused QKV projection: one 2-D MXU matmul, bf16 operands, f32 accumulate.
    # (T is a multiple of 8, so the sublane-merge reshape is layout-trivial.)
    x2 = x_ref[...].reshape(b_blk * T, C).astype(jnp.bfloat16)
    qkv = jnp.dot(x2, wqkv_ref[...], preferred_element_type=jnp.float32)
    qkv = qkv.reshape(b_blk, T, total_pad)

    q = qkv[:, :, 0:H]            # scale already folded into the Q weights
    k = qkv[:, :, H:2 * H]
    v = qkv[:, :, 2 * H:3 * H]

    # affinities: batched contraction over the head dim (no explicit k transpose).
    aff = jnp.einsum("btd,bsd->bts",
                     q.astype(jnp.bfloat16), k.astype(jnp.bfloat16),
                     preferred_element_type=jnp.float32)

    # Causal mask from a single (T, T) compare, broadcast over the batch dim.
    row = lax.broadcasted_iota(jnp.int32, (T, T), 0)
    col = lax.broadcasted_iota(jnp.int32, (T, T), 1)
    aff = jnp.where((col <= row)[None, :, :], aff, -1e30)

    # Softmax in f32; reciprocal lowers to the (otherwise idle) EUP slot.
    m = jnp.max(aff, axis=-1, keepdims=True)
    e = jnp.exp(aff - m)
    s = jnp.sum(e, axis=-1, keepdims=True)
    wei = e * pl.reciprocal(s, approx=True)

    out = jnp.einsum("bts,bsd->btd",
                     wei.astype(jnp.bfloat16), v.astype(jnp.bfloat16),
                     preferred_element_type=jnp.float32)
    o_ref[...] = out.astype(o_ref.dtype)


def _vmem_bytes(b_blk, T, C, total_pad, H):
    """Rough per-grid-step VMEM footprint (compute intermediates + pipelined IO)."""
    f32, bf16 = 4, 2
    compute = b_blk * T * (C * (f32 + bf16)          # x tile + bf16 cast
                           + total_pad * f32         # qkv
                           + 3 * H * (f32 + bf16)    # q/k/v slices (+ bf16 casts)
                           + 2 * T * f32             # aff + exp
                           + H * f32)                # f32 out before narrowing
    io = 2 * (b_blk * T * C * f32 + b_blk * T * H * f32) + 2 * C * total_pad * bf16
    return compute + io


def _pick_b_blk(B, T, C, total_pad, H, *, vmem_budget=24 << 20, min_blocks=2):
    """Largest batch block that (a) leaves >= min_blocks grid steps so both
    TensorCores get work on v7x and the auto-pipeliner has steps to overlap,
    and (b) fits well inside the default 32 MiB scoped VMEM (hence also inside
    v7x's 64 MiB physical VMEM).  On single-TC chips (v5e/v6e) min_blocks=1
    could be used to grow the tile further."""
    best = 1
    for cand in range(1, B + 1):
        if B % cand:
            continue
        if (B // cand) < min_blocks and B >= min_blocks:
            continue
        if _vmem_bytes(cand, T, C, total_pad, H) <= vmem_budget:
            best = cand
    return best


def scaled_dot_product_attention(x, wq, wk, wv, block_size):
    """x: (B, T, C); wq/wk/wv: (C, H). Returns (B, T, H)."""
    B, T, C = x.shape
    H = wq.shape[1]
    assert T <= block_size, "sequence length must not exceed block_size"
    assert T % 8 == 0, "T must be a multiple of 8 (sublane tile) for this kernel"
    scale = float(block_size) ** (-0.5)

    # --- wrapper-side weight prep (layout plumbing, not compute hoisting) ---
    # Pack [Wq*scale | Wk | Wv] contiguously; pad only the TOTAL to 128 lanes.
    total_pad = ((3 * H + 127) // 128) * 128
    wqkv = jnp.zeros((C, total_pad), dtype=jnp.bfloat16)
    wqkv = wqkv.at[:, 0:H].set((wq * scale).astype(jnp.bfloat16))   # fold scale into Wq
    wqkv = wqkv.at[:, H:2 * H].set(wk.astype(jnp.bfloat16))
    wqkv = wqkv.at[:, 2 * H:3 * H].set(wv.astype(jnp.bfloat16))

    b_blk = _pick_b_blk(B, T, C, total_pad, H)
    n_blocks = B // b_blk

    # Executed shapes: projection runs at N = total_pad, attention matmuls at H.
    flops = 2 * B * T * C * total_pad + 4 * B * T * T * H
    bytes_accessed = (x.size * x.dtype.itemsize
                      + wqkv.size * wqkv.dtype.itemsize
                      + B * T * H * x.dtype.itemsize)
    cost = pl.CostEstimate(flops=flops, transcendentals=B * T * T,
                           bytes_accessed=bytes_accessed)

    # NOTE: wqkv's index_map is grid-invariant; for large C one would set
    # pipeline_mode=pl.Buffered(1) on its BlockSpec (or stage it in scratch) to
    # avoid double-buffering the weight tile.  At C=32 the duplicate is negligible.
    return pl.pallas_call(
        _attn_kernel,
        out_shape=jax.ShapeDtypeStruct((B, T, H), x.dtype),
        grid_spec=pltpu.PrefetchScalarGridSpec(
            num_scalar_prefetch=0,
            grid=(n_blocks,),
            in_specs=[
                pl.BlockSpec((b_blk, T, C), lambda b: (b, 0, 0)),
                pl.BlockSpec((C, total_pad), lambda b: (0, 0)),
            ],
            out_specs=pl.BlockSpec((b_blk, T, H), lambda b: (b, 0, 0)),
        ),
        compiler_params=pltpu.CompilerParams(
            dimension_semantics=("parallel",)),
        cost_estimate=cost,
    )(x, wqkv)


def _reference(x, wq, wk, wv, block_size):
    q = x @ wq
    k = x @ wk
    v = x @ wv
    aff = jnp.einsum("btd,bsd->bts", q, k) * (float(block_size) ** -0.5)
    T = x.shape[1]
    mask = jnp.tril(jnp.ones((T, T), dtype=bool))
    aff = jnp.where(mask[None], aff, -jnp.inf)
    wei = jax.nn.softmax(aff, axis=-1)
    return wei @ v


if __name__ == "__main__":
    # Small deterministic setup consistent with the module:
    #   n_embeddings=32, head_size=16, block_size=8, batch=2, T=block_size.
    B, T, C, H = 2, 8, 32, 16
    block_size = 8

    key = jax.random.PRNGKey(0)
    kx, kq, kk, kv = jax.random.split(key, 4)

    x = jax.random.normal(kx, (B, T, C), dtype=jnp.float32)
    # nn.Linear default init ~ U(-1/sqrt(C), 1/sqrt(C)); stored here as (C, H) = W^T.
    bound = 1.0 / (C ** 0.5)
    wq = jax.random.uniform(kq, (C, H), jnp.float32, -bound, bound)
    wk = jax.random.uniform(kk, (C, H), jnp.float32, -bound, bound)
    wv = jax.random.uniform(kv, (C, H), jnp.float32, -bound, bound)

    out = scaled_dot_product_attention(x, wq, wk, wv, block_size)
    out = jax.block_until_ready(out)

    ref = _reference(x, wq, wk, wv, block_size)
    assert out.shape == (B, T, H)
    # Tolerance covers bf16 MXU operands and the approximate (EUP) reciprocal;
    # softmax statistics and all accumulation remain in f32.
    max_err = float(jnp.max(jnp.abs(out - ref)))
    assert jnp.allclose(out, ref, atol=3e-2, rtol=3e-2), (
        f"mismatch vs reference, max abs err {max_err}")

    print("KERNEL_OK")
</pallas_src>

<mosaic_0001>
module attributes {stable_mosaic.version = 11 : i64} {
  func.func @_attn_kernel(%arg0: i32, %arg1: memref<1x8x32xf32, #tpu.memory_space<vmem>>, %arg2: memref<32x128xbf16, #tpu.memory_space<vmem>>, %arg3: memref<1x8x16xf32, #tpu.memory_space<vmem>>) attributes {dimension_semantics = [#tpu.dimension_semantics<parallel>], iteration_bounds = array<i64: 2>, scalar_prefetch = 0 : i64, scratch_operands = 0 : i64, tpu.core_type = #tpu.core_type<tc>, window_params = [{transform_indices = @transform_0, window_bounds = array<i64: 1, 8, 32>}, {pipeline_mode = #tpu.pipeline_mode<synchronous>, transform_indices = @transform_1, window_bounds = array<i64: 32, 128>}, {transform_indices = @transform_2, window_bounds = array<i64: 1, 8, 16>}]} {
    %c0 = arith.constant 0 : index
    %c0_0 = arith.constant 0 : index
    %c0_1 = arith.constant 0 : index
    %0 = vector.load %arg1[%c0, %c0_0, %c0_1] : memref<1x8x32xf32, #tpu.memory_space<vmem>>, vector<1x8x32xf32>
    %1 = vector.shape_cast %0 : vector<1x8x32xf32> to vector<8x32xf32>
    %2 = arith.truncf %1 : vector<8x32xf32> to vector<8x32xbf16>
    %c0_2 = arith.constant 0 : index
    %c0_3 = arith.constant 0 : index
    %3 = vector.load %arg2[%c0_2, %c0_3] : memref<32x128xbf16, #tpu.memory_space<vmem>>, vector<32x128xbf16>
    %cst = arith.constant dense<0.000000e+00> : vector<8x128xf32>
    %4 = tpu.matmul %2, %3, %cst {dimension_numbers = #tpu.dot_dimension_numbers<[1], [0], [0], [1], [0, 0, 1, 1], [], []>} : vector<8x32xbf16>, vector<32x128xbf16>, vector<8x128xf32> -> vector<8x128xf32>
    %5 = vector.shape_cast %4 : vector<8x128xf32> to vector<1x8x128xf32>
    %6 = vector.extract_strided_slice %5 {offsets = [0, 0, 0], sizes = [1, 8, 16], strides = [1, 1, 1]} : vector<1x8x128xf32> to vector<1x8x16xf32>
    %7 = vector.extract_strided_slice %5 {offsets = [0, 0, 16], sizes = [1, 8, 16], strides = [1, 1, 1]} : vector<1x8x128xf32> to vector<1x8x16xf32>
    %8 = vector.extract_strided_slice %5 {offsets = [0, 0, 32], sizes = [1, 8, 16], strides = [1, 1, 1]} : vector<1x8x128xf32> to vector<1x8x16xf32>
    %9 = arith.truncf %6 : vector<1x8x16xf32> to vector<1x8x16xbf16>
    %10 = arith.truncf %7 : vector<1x8x16xf32> to vector<1x8x16xbf16>
    "tpu.trace_start"() <{level = 10 : i32, message = "btd,bsd->bts"}> : () -> ()
    %cst_4 = arith.constant dense<0.000000e+00> : vector<1x8x8xf32>
    %11 = tpu.matmul %9, %10, %cst_4 {dimension_numbers = #tpu.dot_dimension_numbers<[2], [2], [1], [1], [0, 0, 0, 1, 1, 1], [0], [0]>} : vector<1x8x16xbf16>, vector<1x8x16xbf16>, vector<1x8x8xf32> -> vector<1x8x8xf32>
    "tpu.trace_stop"() : () -> ()
    %12 = tpu.iota {dimensions = array<i32: 0>} : vector<8x8xi32>
    %13 = tpu.iota {dimensions = array<i32: 1>} : vector<8x8xi32>
    %14 = arith.cmpi sle, %13, %12 : vector<8x8xi32>
    %15 = vector.shape_cast %14 : vector<8x8xi1> to vector<1x8x8xi1>
    %cst_5 = arith.constant -1.000000e+30 : f32
    %16 = vector.broadcast %cst_5 : f32 to vector<1x8x8xf32>
    %17 = arith.select %15, %11, %16 : vector<1x8x8xi1>, vector<1x8x8xf32>
    %cst_6 = arith.constant dense<0xFF800000> : vector<1x8xf32>
    %18 = vector.multi_reduction <maximumf>, %17, %cst_6 [2] : vector<1x8x8xf32> to vector<1x8xf32>
    %19 = vector.shape_cast %18 : vector<1x8xf32> to vector<1x8x1xf32>
    %20 = vector.broadcast %19 : vector<1x8x1xf32> to vector<1x8x8xf32>
    %21 = arith.subf %17, %20 : vector<1x8x8xf32>
    %22 = math.exp %21 : vector<1x8x8xf32>
    %cst_7 = arith.constant dense<0.000000e+00> : vector<1x8xf32>
    %23 = vector.multi_reduction <add>, %22, %cst_7 [2] : vector<1x8x8xf32> to vector<1x8xf32>
    %24 = vector.shape_cast %23 : vector<1x8xf32> to vector<1x8x1xf32>
    %25 = tpu.reciprocal %24 {approx = true} : vector<1x8x1xf32> -> vector<1x8x1xf32>
    %26 = vector.broadcast %25 : vector<1x8x1xf32> to vector<1x8x8xf32>
    %27 = arith.mulf %22, %26 : vector<1x8x8xf32>
    %28 = arith.truncf %27 : vector<1x8x8xf32> to vector<1x8x8xbf16>
    %29 = arith.truncf %8 : vector<1x8x16xf32> to vector<1x8x16xbf16>
    "tpu.trace_start"() <{level = 10 : i32, message = "bts,bsd->btd"}> : () -> ()
    %cst_8 = arith.constant dense<0.000000e+00> : vector<1x8x16xf32>
    %30 = tpu.matmul %28, %29, %cst_8 {dimension_numbers = #tpu.dot_dimension_numbers<[2], [1], [1], [2], [0, 0, 0, 1, 1, 2], [0], [0]>} : vector<1x8x8xbf16>, vector<1x8x16xbf16>, vector<1x8x16xf32> -> vector<1x8x16xf32>
    "tpu.trace_stop"() : () -> ()
    %c0_9 = arith.constant 0 : index
    %c0_10 = arith.constant 0 : index
    %c0_11 = arith.constant 0 : index
    %31 = vector.load %arg3[%c0_9, %c0_10, %c0_11] : memref<1x8x16xf32, #tpu.memory_space<vmem>>, vector<1x8x16xf32>
    tpu.vector_store %arg3[%c0_9, %c0_10, %c0_11], %30 {strides = array<i32>} : memref<1x8x16xf32, #tpu.memory_space<vmem>>, vector<1x8x16xf32>,
    return
  }
  func.func @transform_0(%arg0: i32) -> (i32, i32, i32) {
    %c0_i32 = arith.constant 0 : i32
    %c0_i32_0 = arith.constant 0 : i32
    %c0_i32_1 = arith.constant 0 : i32
    return %arg0, %c0_i32, %c0_i32_0 : i32, i32, i32
  }
  func.func @transform_1(%arg0: i32) -> (i32, i32) {
    %c0_i32 = arith.constant 0 : i32
    %c0_i32_0 = arith.constant 0 : i32
    %c0_i32_1 = arith.constant 0 : i32
    return %c0_i32, %c0_i32_0 : i32, i32
  }
  func.func @transform_2(%arg0: i32) -> (i32, i32, i32) {
    %c0_i32 = arith.constant 0 : i32
    %c0_i32_0 = arith.constant 0 : i32
    %c0_i32_1 = arith.constant 0 : i32
    return %arg0, %c0_i32, %c0_i32_0 : i32, i32, i32
  }
}

</mosaic_0001>

<bundles_post_ra>
// kernel: tpu_custom_call.1
= control target key start
LH: loop header
LB: loop body
LE: loop exit
PB: predicated region body
PF: predicated region fallthrough
CT: control target
= control target key end

     0   :  { %7 = vsyncpa [#allocation3], 0  ;;  %s768_s0 = inlined_call_operand.hbm [shape: f32[2,8,32], index: 0, kind: input, shape index: {}]   ;;  %s769_s1 = inlined_call_operand.hbm [shape: bf16[32,128], index: 1, kind: input, shape index: {}]   ;;  %s770_s2 = inlined_call_operand.hbm [shape: f32[2,8,16], index: 2, kind: output, shape index: {}]  }
   0x1   :  { %9 = vsyncpa [#allocation3 + $0x1], 0 }
   0x2   :  { %10 = vsyncpa [#allocation6], 0 }
   0x3   :  { %11 = vsyncpa [#allocation4], 0 }
   0x4   :  { %13 = vsyncpa [#allocation4 + $0x1], 0  ;;  %s622_s9 = smov 0   ;;  %s624_s10 = smov 0  }
   0x5   :  { %s626_s11 = smov 0   ;;  %s628_s12 = smov 0  }
   0x6 LB: > { %s108_s15 = sshll.u32 %s769_s1, 4  ;;  %s646_s16 = sadd.s32 4294967295, %s600_s12   ;;  %s600_s12 = sphi %s628_s12, %s780_s12   ;;  %s596_s11 = sphi %s626_s11, %s779_s11   ;;  %s592_s10 = sphi %s624_s10, %s778_s10   ;;  %s588_s9 = sphi %s622_s9, %s777_s9   ;;  %s109_s15 = int_to_ptr.hbm [resolvable:$true] %s108_s15 }
   0x7   : > { %p379_p0 = scmp.ge.s32.totalorder %s600_s12, 1  ;;  %p40_p1 = scmp.eq.s32.totalorder %s646_s16, 0 }
   0x8   : > { %p97_p2 = scmp.lt.s32.totalorder %s600_s12, 3  ;;  %s602_s18 = smov [#allocation5]  }
   0x9   : > { %s110_s19 = sshll.u32 %s602_s18, 4  ;;  %s603_s20 = smov 64   ;;  %s111_s19 = int_to_ptr.vmem [resolvable:$true] %s110_s19 }
   0xa   : > { %p651_p3 = pnand %p379_p0, %p97_p2  ;;  %s604_s21 = smov 4  }
   0xb   : > { %s378_s22 = sadd.s32 4294967294, %s600_s12   ;;  %s662_s23 = sadd.s32 1, %s600_s12  }
   0xc   : > { %p413_p4 = pneg %p651_p3  ;;  %s26_s24 = sadd.s32 1, %s596_s11 }
   0xd   : > { %s23_s25 = ssub.s32 %s600_s12, %s662_s23  ;;  %p33_p7 = scmp.ne.s32.totalorder %s596_s11, %s592_s10 }
   0xe   : > { %p414_p6 = pnand %p413_p4, %p40_p1  ;;  %p24_p8 = scmp.eq.s32.totalorder %s23_s25, 0 }
   0xf   : > { %p34_p9 = scmp.eq.s32.totalorder %s600_s12, 0  ;;  %p39_p10 = scmp.ne.s32.totalorder %s592_s10, %s588_s9 }
  0x10   : > { %416 = dma.hbm_to_vmem [thread:$0]  (!%p414_p6), %s109_s15, 256, %s111_s19, [#allocation6], %s603_s20, %s603_s20, %s604_s21  }
  0x11   : > { %p84_p11 = scmp.eq.s32.totalorder %s646_s16, 1  ;;  %p678_p12 = por %p40_p1, %p39_p10 }
  0x12   : > { %s674_s26 = scalar_select %p24_p8, %s596_s11, %s26_s24  }
  0x13   : > { %p682_p13 = por %p84_p11, %p33_p7  ;;  %p90_p0 = scmp.eq.s32.totalorder %s378_s22, 1 }
  0x14   : > { %p35_p2 = por %p34_p9, %p33_p7  ;;  %s124_s29 = sand.u32 1, %s596_s11  }
  0x15   : > { %p687_p4 = por %p90_p0, %p39_p10  ;;  %p426_p6 = scmp.lt.s32.totalorder %s600_s12, 2 }
  0x16   : > { %s382_s3 = sshll.u32 %s124_s29, 3  ;;  %s383_s4 = sshll.u32 %s600_s12, 3 }
  0x17   : > { %s132_s7 = scalar_lea.hbm %s768_s0, %s383_s4  ;;  %s128_s13 = scalar_lea.vmem [#allocation2], %s382_s3 }
  0x18   : > { %s134_s8 = sshll.u32 %s132_s7, 4  ;;  %s136_s14 = sshll.u32 %s128_s13, 4  ;;  %s135_s8 = int_to_ptr.hbm [resolvable:$true] %s134_s8  ;;  %s137_s14 = int_to_ptr.vmem [resolvable:$true] %s136_s14 }
  0x19   : > { %p696_p8 = pnand %p426_p6, %p35_p2  ;;  %s125_s18 = scalar_lea.sflag [#allocation3], %s124_s29 }
  0x1a   : > { %s500_s19 = sshra.s32 %s135_s8, 4  ;;  %s507_s24 = scalar_lea.hbm %s768_s0, 16  ;;  %s501_s19 = int_to_ptr.hbm [resolvable:$true] %s500_s19 }
  0x1b   : > { %s502_s20 = scalar_lea.hbm %s501_s19, 8  ;;  %p504_p9 = pneg %p696_p8 }
  0x1c   : > { %p503_p7 = scmp.ne.s32.totalorder %s501_s19, %s502_s20  ;;  %p508_p0 = scmp.lt.s32.totalorder %s501_s19, %s768_s0 }
  0x1d   : > { %p509_p2 = scmp.lt.s32.totalorder %s507_s24, %s502_s20 }
  0x1e   : > { %p505_p10 = pnand %p504_p9, %p503_p7 }
  0x1f   : > { %p510_p6 = por %p509_p2, %p508_p0 }
  0x20   : > { %p506_p11 = pneg %p505_p10 }
  0x22   : > { %p511_p5 = pnand %p510_p6, %p506_p11 }
  0x24   : > { %514 = shalt.err (!%p511_p5)
}
  0x25   : > { %420 = dma.hbm_to_vmem [thread:$0]  (!%p696_p8), %s135_s8, 128, %s137_s14, %s125_s18  }
  0x26   : > { %145 = sbr.rel (%p651_p3) target bundleno = 849 (0x351), region = 28  ;;  %s713_s29 = sand.u32 (!%p651_p3), 1, %s592_s10  }
  0x27   : > { %s385_s4 = sshll.u32 (!%p651_p3), %s713_s29, 3  ;;  %s148_s5 = scalar_lea.sflag (!%p651_p3), [#allocation3], %s713_s29 }
  0x28   : > { %s151_s6 = scalar_lea.vmem (!%p651_p3), [#allocation2], %s385_s4 }
  0x2b   : > { %575 = dma.done.wait (%p678_p12), %s148_s5, 128  }
  0x2c   : > { %577 = vsyncadd (%p678_p12), %s148_s5, 4294967168 }
  0x2d   : > { %579 = dma.done.wait (%p40_p1), [#allocation6], 256  }
  0x2e   : > { %581 = vsyncadd (%p40_p1), [#allocation6], 4294967040  ;;  %v404_v0 = vld [vmem:[#allocation5 + $0x8] sm:$0xff]  ;;  %v403_v1 = vld [vmem:[#allocation5] sm:$0xff]  ;;  %vm197_vm0 = vcmask 261120   ;;  %s605_s17 = smov 112   ;;  %v240_v11 = vlaneseq }
  0x2f   : > { %207 = vmatpush.bf16.msra.mxu0 %v404_v0  ;;  %v179_v2 = vld [vmem:[%s151_s6] sm:$0xff]  ;;  %vm220_vm1 = vcmask 130048   ;;  %vm246_vm3 = vcmask 64512   ;;  %s606_s27 = smov 96   ;;  %vm264_vm4 = vcmask 1043456   ;;  %s400_s7 = sshll.u32 %s646_s16, 3 }
  0x30   : > { %v180_v3 = vpack.c.bf16 %v179_v2, %v179_v2  ;;  %v241_v12 = vshrl.u32 %v240_v11, 7  ;;  %v243_v13 = vand.u32 127, %v240_v11  ;;  %s293_s14 = scalar_lea.hbm %s770_s2, %s400_s7  ;;  %s177_s15 = scalar_lea.vmem [#allocation7], %s385_s4 }
  0x31   : > { %s295_s18 = sshll.u32 %s177_s15, 4  ;;  %s297_s19 = sshll.u32 %s293_s14, 4  ;;  %s296_s18 = int_to_ptr.vmem [resolvable:$true] %s295_s18  ;;  %s298_s19 = int_to_ptr.hbm [resolvable:$true] %s297_s19 }
  0x32   : > { %vm244_vm2 = vcmp.le.s32.totalorder %v243_v13, %v241_v12  ;;  %s283_s20 = scalar_lea.sflag [#allocation4], %s713_s29  ;;  %s544_s21 = sshra.s32 %s298_s19, 4  ;;  %s545_s21 = int_to_ptr.hbm [resolvable:$true] %s544_s21 }
  0x33   : > { %208 = vmatpush.bf16.msra.mxu0 %v403_v1  ;;  %s546_s22 = scalar_lea.hbm %s545_s21, 8  ;;  %s550_s25 = scalar_lea.hbm %s770_s2, 16 }
  0x34   : > { %p547_p1 = scmp.ne.s32.totalorder %s545_s21, %s546_s22  ;;  %p551_p12 = scmp.lt.s32.totalorder %s545_s21, %s770_s2 }
  0x35   : > { %p552_p8 = scmp.lt.s32.totalorder %s550_s25, %s546_s22 }
  0x36   : > { %396 = vmatmul.msk.bf16.vlgmr.msra.gmra.mxu0 %vm197_vm0, %v180_v3  ;;  %p548_p3 = pnand %p547_p1, %p682_p13 }
  0x37   : > { %p553_p7 = por %p552_p8, %p551_p12 }
  0x38   : > { %p549_p5 = pneg %p548_p3 }
  0x3a   : > { %p554_p9 = pnand %p553_p7, %p549_p5 }
  0xb3   : > { %v210_v4 = vpop.f32.mrf.mxu0 }
  0xb4   : > { %v214_v5 = vpack.c.bf16 %v210_v4, %v210_v4 }
  0xb6   : > { %v216_v6 = vunpack.c.l.b16 %v214_v5 }
  0xb8   : > { %v217_v7 = vpack.c.b16 %v216_v6, %v216_v6 }
  0xba   : > { %218 = vrot.lane.b32.xlu0 %v217_v7, %s605_s17 }
  0xbb   : > { %v212_v8 = vpop.f32.mrf.mxu0 }
 0x12c   : > { %v219_v9 = vpop.permute.xlu0 %218 }
 0x12d   : > { %v225_v10 = vsel %vm220_vm1, %v219_v9, 0 }
 0x12e   : > { %234 = vmatpush.bf16.xpose.msra.mxu1 %v225_v10 }
 0x135   : > { %397 = vmatmul.msk.bf16.vlgmr.msra.gmra.mxu1 %vm220_vm1, %v214_v5 }
 0x1b2   : > { %v236_v14 = vpop.f32.mrf.mxu1 }
 0x1b3   : > { %v245_v15 = vsel %vm244_vm2, %v236_v14, -1e+30 }
 0x1b4   : > { %v247_v16 = vsel %vm246_vm3, %v245_v15, -inf }
 0x1b5   : > { %248 = vmax.xlane.f32.xlu0 %v247_v16 }
 0x1ba   : > { %v238_v17 = vpop.f32.mrf.mxu1 }
 0x228   : > { %v249_v18 = vpop.xlane.xlu0 %248 }
 0x229   : > { %v250_v19 = vsub.f32 %v245_v15, %v249_v18 }
 0x22b   : > { %v251_v20 = vmul.f32 1.442695, %v250_v19 }
 0x22d   : > { %466 = vpow2.f32 %v251_v20 }
 0x233   : > { %v467_v21 = vpop.eup %466 }
 0x234   : > { %v253_v22 = vsel %vm246_vm3, %v467_v21, 0.0 }
 0x235   : > { %254 = vadd.xlane.f32.xlu1 %v253_v22 }
 0x24e   : > { %259 = vrot.lane.b32.xlu1 %v217_v7, %s606_s27 }
 0x2a8   : > { %v255_v23 = vpop.xlane.xlu1 %254 }
 0x2a9   : > { %468 = vrcp.f32 %v255_v23 }
 0x2af   : > { %v469_v24 = vpop.eup %468 }
 0x2b0   : > { %v257_v25 = vmul.f32 %v469_v24, %v467_v21 }
 0x2b2   : > { %v258_v28 = vpack.c.bf16 %v257_v25, %v257_v25 }
 0x2c0   : > { %v260_v26 = vpop.permute.xlu1 %259 }
 0x2c1   : > { %v266_v27 = vsel %vm264_vm4, %v260_v26, 0 }
 0x2c2   : > { %275 = vmatpush.bf16.msra.mxu2 %v266_v27 }
 0x2c5   : > { %398 = vmatmul.msk.bf16.vlgmr.msra.gmra.mxu2 %vm246_vm3, %v258_v28 }
 0x348   : > { %v277_v29 = vpop.f32.mrf.mxu2 }
 0x349   : > { %281 = vst.msk [vmem:[%s177_s15] sm:$0xff] %vm220_vm1, %v277_v29 }
 0x34a   : > { %557 = shalt.err (!%p554_p9)
}
 0x34b   : > { %411 = dma.vmem_to_hbm [thread:$0]  (%p682_p13), %s296_s18, 128, %s298_s19, %s283_s20  }
 0x350   : > { %v279_v30 = vpop.f32.mrf.mxu2 }
 0x351 PF: > { %s309_s29 = sand.u32 1, %s588_s9   ;;  %p776_p10 = scmp.ge.s32.totalorder %s600_s12, 2 }
 0x352   : > { %s310_s5 = scalar_lea.sflag [#allocation4], %s309_s29 }
 0x353   : > { %p422_p11 = pnand %p776_p10, %p687_p4 }
 0x355   : > { %p423_p0 = pneg %p422_p11 }
 0x357   : > { %583 = dma.done.wait (%p423_p0), %s310_s5, 128  }
 0x358   : > { %585 = vsyncadd (%p423_p0), %s310_s5, 4294967168  ;;  %p16_p2 = scmp.ge.s32.totalorder %s662_s23, 4   ;;  %s777_s9 = smov %s592_s10 }
 0x359   : > { %s778_s10 = smov %s596_s11  ;;  %s779_s11 = smov %s674_s26 }
 0x35a   : > { %s780_s12 = smov %s662_s23  ;;  %18 = sbr.rel (!%p16_p2) target bundleno = 6 (0x6), region = 77 }
 0x35f   :  { %316 = vsyncpa [#allocation3], 1 }
 0x360   :  { %318 = vsyncpa [#allocation3 + $0x1], 1 }
 0x361   :  { %319 = vsyncpa [#allocation6], 1 }
 0x362   :  { %320 = vsyncpa [#allocation4], 1 }
 0x363   :  { %322 = vsyncpa [#allocation4 + $0x1], 1 }

</bundles_post_ra>
